<compile_context>
chip_gen: v6e
topology: v6e:2x2x1
jax: 0.10.0
libtpu: 0.0.40
codegen_flags: <defaults>
</compile_context>

<pallas_src>
import jax
import jax.numpy as jnp
from jax.experimental import pallas as pl
from jax.experimental.pallas import tpu as pltpu


def _exposure_kernel(img_ref, bias_ref, exp_ref, out_ref):
    # img_ref:  VMEM (tr, hw)  -- flattened (batch*channel, spatial) rows
    # bias_ref: VMEM (tr, 1)   -- per-row channel bias (broadcasts over lanes)
    # exp_ref:  VMEM (tr, 1)   -- per-row exposure scale (broadcasts over lanes)
    # out_ref:  VMEM (tr, hw)
    out_ref[...] = jnp.clip(
        (img_ref[...] + bias_ref[...]) * exp_ref[...], 0.0, 1.0
    )


def _choose_row_block(rows, hw, itemsize, per_buffer_budget_bytes=6 << 20):
    """Largest row chunk whose double-buffered in/out tiles fit the budget."""
    max_rows = max(1, per_buffer_budget_bytes // max(1, hw * itemsize))
    tr = min(rows, max_rows)
    if tr < rows:
        # Partial tiling: keep the block sublane-legal (multiple of 8).
        tr = max(8, (tr // 8) * 8)
        tr = min(tr, rows)
    return tr


def exposure_net_forward(params, image, weight, bias):
    """params: (b,1) f32, image: (b,c,h,w) f32, weight: (1,1) f32, bias: (c,) f32."""
    b, c, h, w = image.shape
    hw = h * w
    rows = b * c

    # Sublane/lane-dense layout: (batch*channel, spatial).
    img_flat = image.reshape(rows, hw)

    # exp = Linear(1,1,bias=False)(params); tiny (b,1) op, done in plain JAX
    # since it is also returned as a module output.
    exp = params @ weight.T                              # (b, 1)

    # Per-row broadcast columns (row index = batch * c + channel).
    exp_col = jnp.repeat(exp, c, axis=0)                 # (rows, 1)
    bias_col = jnp.tile(bias, (b,)).reshape(rows, 1)     # (rows, 1)

    itemsize = jnp.dtype(image.dtype).itemsize
    tr = _choose_row_block(rows, hw, itemsize)
    grid = (pl.cdiv(rows, tr),)

    cost = pl.CostEstimate(
        flops=4 * rows * hw,                             # add, mul, 2x clamp
        transcendentals=0,
        bytes_accessed=(2 * rows * hw + 2 * rows) * itemsize,
    )

    out_flat = pl.pallas_call(
        _exposure_kernel,
        out_shape=jax.ShapeDtypeStruct((rows, hw), image.dtype),
        grid_spec=pltpu.PrefetchScalarGridSpec(
            num_scalar_prefetch=0,
            grid=grid,
            in_specs=[
                pl.BlockSpec((tr, hw), lambda i: (i, 0)),   # image rows
                pl.BlockSpec((tr, 1), lambda i: (i, 0)),    # bias column
                pl.BlockSpec((tr, 1), lambda i: (i, 0)),    # exposure column
            ],
            out_specs=pl.BlockSpec((tr, hw), lambda i: (i, 0)),
        ),
        compiler_params=pltpu.CompilerParams(
            dimension_semantics=("parallel",),              # rows independent
            vmem_limit_bytes=48 << 20,                      # safe on v5e/v6e/v7x
        ),
        cost_estimate=cost,
    )(img_flat, bias_col, exp_col)

    return out_flat.reshape(b, c, h, w), exp


if __name__ == "__main__":
    key = jax.random.PRNGKey(0)
    kp, ki = jax.random.split(key)

    b, c, h, w = 2, 4, 16, 16
    params = jax.random.uniform(kp, (b, 1), dtype=jnp.float32,
                                minval=0.0, maxval=2.0)
    image = jax.random.uniform(ki, (b, c, h, w), dtype=jnp.float32)

    # Deterministic parameter init, matching the PyTorch module's __init__:
    # linear.weight = ones (1,1), no bias; self.bias = zeros(4).
    weight = jnp.ones((1, 1), dtype=jnp.float32)
    bias = jnp.zeros((c,), dtype=jnp.float32)

    out, exp = exposure_net_forward(params, image, weight, bias)
    out = jax.block_until_ready(out)
    exp = jax.block_until_ready(exp)

    # Pure-JAX reference check.
    exp_ref = params @ weight.T
    out_ref = jnp.clip(
        (image + bias[None, :, None, None]) * exp_ref[:, :, None, None],
        0.0, 1.0)
    assert jnp.allclose(exp, exp_ref, atol=1e-6)
    assert jnp.allclose(out, out_ref, atol=1e-6)

    print("KERNEL_OK")
</pallas_src>

<mosaic_0001>
module attributes {stable_mosaic.version = 11 : i64} {
  func.func @_exposure_kernel(%arg0: i32, %arg1: memref<8x256xf32, #tpu.memory_space<vmem>>, %arg2: memref<8x1xf32, #tpu.memory_space<vmem>>, %arg3: memref<8x1xf32, #tpu.memory_space<vmem>>, %arg4: memref<8x256xf32, #tpu.memory_space<vmem>>) attributes {dimension_semantics = [#tpu.dimension_semantics<parallel>], iteration_bounds = array<i64: 1>, scalar_prefetch = 0 : i64, scratch_operands = 0 : i64, tpu.core_type = #tpu.core_type<tc>, window_params = [{transform_indices = @transform_0, window_bounds = array<i64: 8, 256>}, {transform_indices = @transform_1, window_bounds = array<i64: 8, 1>}, {transform_indices = @transform_2, window_bounds = array<i64: 8, 1>}, {transform_indices = @transform_3, window_bounds = array<i64: 8, 256>}]} {
    %c0 = arith.constant 0 : index
    %c0_0 = arith.constant 0 : index
    %0 = vector.load %arg1[%c0, %c0_0] : memref<8x256xf32, #tpu.memory_space<vmem>>, vector<8x256xf32>
    %c0_1 = arith.constant 0 : index
    %c0_2 = arith.constant 0 : index
    %1 = vector.load %arg2[%c0_1, %c0_2] : memref<8x1xf32, #tpu.memory_space<vmem>>, vector<8x1xf32>
    %2 = vector.broadcast %1 : vector<8x1xf32> to vector<8x256xf32>
    %3 = arith.addf %0, %2 : vector<8x256xf32>
    %c0_3 = arith.constant 0 : index
    %c0_4 = arith.constant 0 : index
    %4 = vector.load %arg3[%c0_3, %c0_4] : memref<8x1xf32, #tpu.memory_space<vmem>>, vector<8x1xf32>
    %5 = vector.broadcast %4 : vector<8x1xf32> to vector<8x256xf32>
    %6 = arith.mulf %3, %5 : vector<8x256xf32>
    %cst = arith.constant 0.000000e+00 : f32
    %cst_5 = arith.constant 1.000000e+00 : f32
    %7 = vector.broadcast %cst : f32 to vector<8x256xf32>
    %8 = arith.maximumf %7, %6 : vector<8x256xf32>
    %9 = vector.broadcast %cst_5 : f32 to vector<8x256xf32>
    %10 = arith.minimumf %9, %8 : vector<8x256xf32>
    %c0_6 = arith.constant 0 : index
    %c0_7 = arith.constant 0 : index
    %11 = vector.load %arg4[%c0_6, %c0_7] : memref<8x256xf32, #tpu.memory_space<vmem>>, vector<8x256xf32>
    tpu.vector_store %arg4[%c0_6, %c0_7], %10 {strides = array<i32>} : memref<8x256xf32, #tpu.memory_space<vmem>>, vector<8x256xf32>,
    return
  }
  func.func @transform_0(%arg0: i32) -> (i32, i32) {
    %c0_i32 = arith.constant 0 : i32
    %c0_i32_0 = arith.constant 0 : i32
    return %arg0, %c0_i32 : i32, i32
  }
  func.func @transform_1(%arg0: i32) -> (i32, i32) {
    %c0_i32 = arith.constant 0 : i32
    %c0_i32_0 = arith.constant 0 : i32
    return %arg0, %c0_i32 : i32, i32
  }
  func.func @transform_2(%arg0: i32) -> (i32, i32) {
    %c0_i32 = arith.constant 0 : i32
    %c0_i32_0 = arith.constant 0 : i32
    return %arg0, %c0_i32 : i32, i32
  }
  func.func @transform_3(%arg0: i32) -> (i32, i32) {
    %c0_i32 = arith.constant 0 : i32
    %c0_i32_0 = arith.constant 0 : i32
    return %arg0, %c0_i32 : i32, i32
  }
}

</mosaic_0001>

<bundles_post_ra>
// kernel: tpu_custom_call.1
= control target key start
LH: loop header
LB: loop body
LE: loop exit
PB: predicated region body
PF: predicated region fallthrough
CT: control target
= control target key end

     0   :  { %v78_v1 = vmov 0   ;;  %s115_s0 = inlined_call_operand.vmem [shape: f32[8,256], index: 0, kind: input, shape index: {}]   ;;  %s116_s1 = inlined_call_operand.vmem [shape: f32[8,1], index: 1, kind: input, shape index: {}]   ;;  %s117_s2 = inlined_call_operand.vmem [shape: f32[8,1], index: 2, kind: input, shape index: {}]   ;;  %s118_s3 = inlined_call_operand.hbm [shape: f32[8,256], index: 3, kind: output, shape index: {}]  }
   0x1   :  { %v17_v0 = vld [vmem:[%s116_s1] sm:$0xff]  ;;  %55 = vset.pattern.permute.xlu0 %v78_v1 }
   0x2   :  { %8 = vsyncpa [#allocation3], 0  ;;  %20 = vperm.xlu0 %55, %v17_v0   ;;  %v25_v2 = vld [vmem:[%s117_s2] sm:$0xff]  ;;  %v16_v5 = vld [vmem:[%s115_s0 + $0x8] sm:$0xff]  ;;  %s79_s1 = smov [#allocation2]  }
   0x3   :  { %v15_v4 = vld [vmem:[%s115_s0] sm:$0xff]  ;;  %s45_s20 = sshll.u32 %s79_s1, 4  ;;  %s46_s20 = int_to_ptr.vmem [resolvable:$true] %s45_s20 }
   0x4   :  { %s56_s2 = scalar_lea.vmem %s46_s20, 256  ;;  %p61_p1 = scmp.lt.s32.totalorder %s46_s20, %s46_s20 }
   0x5   :  { %p57_p0 = scmp.ne.s32.totalorder %s46_s20, %s56_s2  ;;  %p62_p2 = scmp.lt.s32.totalorder %s56_s2, %s56_s2 }
   0x6   :  { %28 = vperm.xlu0 %55, %v25_v2  }
   0x7   :  { %p63_p3 = por %p62_p2, %p61_p1 }
   0x9   :  { %p64_p4 = pnand %p63_p3, %p57_p0 }
  0x7d   :  { %v21_v3 = vpop.permute.xlu0 %20 }
  0x7e   :  { %v23_v6 = vadd.f32 %v21_v3, %v15_v4  ;;  %v24_v7 = vadd.f32 %v21_v3, %v16_v5 }
  0x81   :  { %v29_v8 = vpop.permute.xlu0 %28 }
  0x82   :  { %v31_v9 = vmul.f32 %v29_v8, %v23_v6  ;;  %v32_v10 = vmul.f32 %v29_v8, %v24_v7 }
  0x84   :  { %v33_v11 = vmax.f32 %v31_v9, 0.0  ;;  %v34_v12 = vmax.f32 %v32_v10, 0.0 }
  0x86   :  { %v35_v13 = vmin.f32 %v33_v11, 1.0  ;;  %v36_v14 = vmin.f32 %v34_v12, 1.0 }
  0x88   :  { %37 = vst [vmem:[#allocation2] sm:$0xff] %v35_v13  ;;  %38 = vst [vmem:[#allocation2 + $0x8] sm:$0xff] %v36_v14 }
  0x89   :  { %67 = shalt.err (!%p64_p4)
}
  0x8a   :  { %48 = dma.vmem_to_hbm [thread:$0]  %s46_s20, 256, %s118_s3, [#allocation3]  }
  0x8b   :  { %76 = dma.done.wait [#allocation3], 256  }
  0x8c   :  { %77 = vsyncadd [#allocation3], 4294967040 }
  0x8d   :  { %52 = vsyncpa [#allocation3], 1 }

</bundles_post_ra>
